<compile_context>
chip_gen: v5e
topology: v5e:2x2
jax: 0.10.0
libtpu: 0.0.40
codegen_flags: <defaults>
</compile_context>

<pallas_src>
import jax
import jax.numpy as jnp
from jax.experimental import pallas as pl
from jax.experimental.pallas import tpu as pltpu

IN_DIM = 6
H1_DIM = 128
H2_DIM = 64
OUT_DIM = 1

IN_PAD = 8         # 6 features zero-padded to 8 (sublane-friendly K)
OUT_PAD = 8        # 1 output column zero-padded to 8
SUBLANE = 8        # batch padding multiple
TILE_B_MAX = 1024  # max batch rows per grid step (VMEM use ~1.5 MiB/step)


def _mlp_kernel(x_ref, w1_ref, b1_ref, w2_ref, b2_ref, w3_ref, b3_ref, o_ref):
    # Fused 3-layer MLP; all operands resident in VMEM.
    x = x_ref[...]                                                     # [T, 8]
    h1 = jnp.dot(x, w1_ref[...], preferred_element_type=jnp.float32)   # [T, 128]
    h1 = jnp.maximum(h1 + b1_ref[...], 0.0)
    h2 = jnp.dot(h1, w2_ref[...], preferred_element_type=jnp.float32)  # [T, 64]
    h2 = jnp.maximum(h2 + b2_ref[...], 0.0)
    o_ref[...] = (
        jnp.dot(h2, w3_ref[...], preferred_element_type=jnp.float32)   # [T, 8]
        + b3_ref[...]
    )


def _pad_to(a, rows, cols):
    r, c = a.shape
    return jnp.pad(a, ((0, rows - r), (0, cols - c)))


def prepare_params(params):
    """Pad / reshape parameters once (hoisted out of the per-call forward)."""
    return {
        "w1": _pad_to(params["w1"].astype(jnp.float32), IN_PAD, H1_DIM),   # [8, 128]
        "b1": params["b1"].astype(jnp.float32).reshape(1, H1_DIM),         # [1, 128]
        "w2": params["w2"].astype(jnp.float32),                            # [128, 64]
        "b2": params["b2"].astype(jnp.float32).reshape(1, H2_DIM),         # [1, 64]
        "w3": _pad_to(params["w3"].astype(jnp.float32), H2_DIM, OUT_PAD),  # [64, 8]
        "b3": _pad_to(params["b3"].astype(jnp.float32).reshape(1, OUT_DIM),
                      1, OUT_PAD),                                         # [1, 8]
    }


@jax.jit
def poker_net_forward(x, padded_params):
    """x: [B, 6] float32 -> [B, 1] float32 (uses params from prepare_params)."""
    p = padded_params
    B = x.shape[0]

    # Tile size: up to TILE_B_MAX rows, shrunk (8-aligned) for small batches.
    b8 = ((B + SUBLANE - 1) // SUBLANE) * SUBLANE
    tile_b = min(TILE_B_MAX, b8)
    Bp = ((B + tile_b - 1) // tile_b) * tile_b
    grid = (Bp // tile_b,)

    # Only x needs per-call padding: [B, 6] -> [Bp, 8] (zeros are inert).
    x_p = jnp.pad(x.astype(jnp.float32), ((0, Bp - B), (0, IN_PAD - IN_DIM)))

    out_p = pl.pallas_call(
        _mlp_kernel,
        out_shape=jax.ShapeDtypeStruct((Bp, OUT_PAD), jnp.float32),
        grid_spec=pltpu.PrefetchScalarGridSpec(
            num_scalar_prefetch=0,
            grid=grid,
            in_specs=[
                pl.BlockSpec((tile_b, IN_PAD), lambda i: (i, 0)),    # x tile
                pl.BlockSpec((IN_PAD, H1_DIM), lambda i: (0, 0)),    # w1 [8,128]
                pl.BlockSpec((1, H1_DIM), lambda i: (0, 0)),         # b1 [1,128]
                pl.BlockSpec((H1_DIM, H2_DIM), lambda i: (0, 0)),    # w2 [128,64]
                pl.BlockSpec((1, H2_DIM), lambda i: (0, 0)),         # b2 [1,64]
                pl.BlockSpec((H2_DIM, OUT_PAD), lambda i: (0, 0)),   # w3 [64,8]
                pl.BlockSpec((1, OUT_PAD), lambda i: (0, 0)),        # b3 [1,8]
            ],
            out_specs=pl.BlockSpec((tile_b, OUT_PAD), lambda i: (i, 0)),
        ),
        compiler_params=pltpu.CompilerParams(
            # Batch axis is embarrassingly parallel -> megacore sharding on v7x.
            dimension_semantics=("parallel",),
        ),
    )(x_p, p["w1"], p["b1"], p["w2"], p["b2"], p["w3"], p["b3"])

    return out_p[:B, :OUT_DIM]


def init_params(key):
    """Deterministic init mirroring nn.Linear shapes (stored as [in, out])."""
    k1, k2, k3, k4, k5, k6 = jax.random.split(key, 6)

    def uniform(k, shape, fan_in):
        bound = 1.0 / jnp.sqrt(jnp.float32(fan_in))
        return jax.random.uniform(k, shape, jnp.float32, -bound, bound)

    return {
        "w1": uniform(k1, (IN_DIM, H1_DIM), IN_DIM),
        "b1": uniform(k2, (H1_DIM,), IN_DIM),
        "w2": uniform(k3, (H1_DIM, H2_DIM), H1_DIM),
        "b2": uniform(k4, (H2_DIM,), H1_DIM),
        "w3": uniform(k5, (H2_DIM, OUT_DIM), H2_DIM),
        "b3": uniform(k6, (OUT_DIM,), H2_DIM),
    }


def _reference(x, p):
    h1 = jnp.maximum(x @ p["w1"] + p["b1"], 0.0)
    h2 = jnp.maximum(h1 @ p["w2"] + p["b2"], 0.0)
    return h2 @ p["w3"] + p["b3"]


if __name__ == "__main__":
    key = jax.random.PRNGKey(0)
    pkey, xkey, xkey2 = jax.random.split(key, 3)
    params = init_params(pkey)
    padded = prepare_params(params)

    # Small-shape check (batch=2), matching the module's input of 6 features.
    B = 2
    x = jax.random.normal(xkey, (B, IN_DIM), jnp.float32)
    out = jax.block_until_ready(poker_net_forward(x, padded))
    ref = _reference(x, params)
    assert out.shape == (B, OUT_DIM), out.shape
    assert jnp.allclose(out, ref, atol=1e-5, rtol=1e-5), (out, ref)

    # Multi-tile check: exercises grid > 1 and batch-row padding.
    B2 = 2304
    x2 = jax.random.normal(xkey2, (B2, IN_DIM), jnp.float32)
    out2 = jax.block_until_ready(poker_net_forward(x2, padded))
    ref2 = _reference(x2, params)
    assert out2.shape == (B2, OUT_DIM), out2.shape
    assert jnp.allclose(out2, ref2, atol=1e-5, rtol=1e-5)

    print("KERNEL_OK")
</pallas_src>

<mosaic_0001>
module attributes {stable_mosaic.version = 11 : i64} {
  func.func @_mlp_kernel(%arg0: i32, %arg1: memref<8x8xf32, #tpu.memory_space<vmem>>, %arg2: memref<8x128xf32, #tpu.memory_space<vmem>>, %arg3: memref<1x128xf32, #tpu.memory_space<vmem>>, %arg4: memref<128x64xf32, #tpu.memory_space<vmem>>, %arg5: memref<1x64xf32, #tpu.memory_space<vmem>>, %arg6: memref<64x8xf32, #tpu.memory_space<vmem>>, %arg7: memref<1x8xf32, #tpu.memory_space<vmem>>, %arg8: memref<8x8xf32, #tpu.memory_space<vmem>>) attributes {dimension_semantics = [#tpu.dimension_semantics<parallel>], iteration_bounds = array<i64: 1>, scalar_prefetch = 0 : i64, scratch_operands = 0 : i64, tpu.core_type = #tpu.core_type<tc>, window_params = [{transform_indices = @transform_0, window_bounds = array<i64: 8, 8>}, {pipeline_mode = #tpu.pipeline_mode<synchronous>, transform_indices = @transform_1, window_bounds = array<i64: 8, 128>}, {pipeline_mode = #tpu.pipeline_mode<synchronous>, transform_indices = @transform_2, window_bounds = array<i64: 1, 128>}, {pipeline_mode = #tpu.pipeline_mode<synchronous>, transform_indices = @transform_3, window_bounds = array<i64: 128, 64>}, {pipeline_mode = #tpu.pipeline_mode<synchronous>, transform_indices = @transform_4, window_bounds = array<i64: 1, 64>}, {pipeline_mode = #tpu.pipeline_mode<synchronous>, transform_indices = @transform_5, window_bounds = array<i64: 64, 8>}, {pipeline_mode = #tpu.pipeline_mode<synchronous>, transform_indices = @transform_6, window_bounds = array<i64: 1, 8>}, {transform_indices = @transform_7, window_bounds = array<i64: 8, 8>}]} {
    %c0 = arith.constant 0 : index
    %c0_0 = arith.constant 0 : index
    %0 = vector.load %arg1[%c0, %c0_0] : memref<8x8xf32, #tpu.memory_space<vmem>>, vector<8x8xf32>
    %c0_1 = arith.constant 0 : index
    %c0_2 = arith.constant 0 : index
    %1 = vector.load %arg2[%c0_1, %c0_2] : memref<8x128xf32, #tpu.memory_space<vmem>>, vector<8x128xf32>
    %cst = arith.constant dense<0.000000e+00> : vector<8x128xf32>
    %2 = tpu.matmul %0, %1, %cst {dimension_numbers = #tpu.dot_dimension_numbers<[1], [0], [0], [1], [0, 0, 1, 1], [], []>} : vector<8x8xf32>, vector<8x128xf32>, vector<8x128xf32> -> vector<8x128xf32>
    %c0_3 = arith.constant 0 : index
    %c0_4 = arith.constant 0 : index
    %3 = vector.load %arg3[%c0_3, %c0_4] : memref<1x128xf32, #tpu.memory_space<vmem>>, vector<1x128xf32>
    %4 = vector.broadcast %3 : vector<1x128xf32> to vector<8x128xf32>
    %5 = arith.addf %2, %4 : vector<8x128xf32>
    %cst_5 = arith.constant 0.000000e+00 : f32
    %6 = vector.broadcast %cst_5 : f32 to vector<8x128xf32>
    %7 = arith.maximumf %5, %6 : vector<8x128xf32>
    %c0_6 = arith.constant 0 : index
    %c0_7 = arith.constant 0 : index
    %8 = vector.load %arg4[%c0_6, %c0_7] : memref<128x64xf32, #tpu.memory_space<vmem>>, vector<128x64xf32>
    %cst_8 = arith.constant dense<0.000000e+00> : vector<8x64xf32>
    %9 = tpu.matmul %7, %8, %cst_8 {dimension_numbers = #tpu.dot_dimension_numbers<[1], [0], [0], [1], [0, 0, 1, 1], [], []>} : vector<8x128xf32>, vector<128x64xf32>, vector<8x64xf32> -> vector<8x64xf32>
    %c0_9 = arith.constant 0 : index
    %c0_10 = arith.constant 0 : index
    %10 = vector.load %arg5[%c0_9, %c0_10] : memref<1x64xf32, #tpu.memory_space<vmem>>, vector<1x64xf32>
    %11 = vector.broadcast %10 : vector<1x64xf32> to vector<8x64xf32>
    %12 = arith.addf %9, %11 : vector<8x64xf32>
    %cst_11 = arith.constant 0.000000e+00 : f32
    %13 = vector.broadcast %cst_11 : f32 to vector<8x64xf32>
    %14 = arith.maximumf %12, %13 : vector<8x64xf32>
    %c0_12 = arith.constant 0 : index
    %c0_13 = arith.constant 0 : index
    %15 = vector.load %arg6[%c0_12, %c0_13] : memref<64x8xf32, #tpu.memory_space<vmem>>, vector<64x8xf32>
    %cst_14 = arith.constant dense<0.000000e+00> : vector<8x8xf32>
    %16 = tpu.matmul %14, %15, %cst_14 {dimension_numbers = #tpu.dot_dimension_numbers<[1], [0], [0], [1], [0, 0, 1, 1], [], []>} : vector<8x64xf32>, vector<64x8xf32>, vector<8x8xf32> -> vector<8x8xf32>
    %c0_15 = arith.constant 0 : index
    %c0_16 = arith.constant 0 : index
    %17 = vector.load %arg7[%c0_15, %c0_16] : memref<1x8xf32, #tpu.memory_space<vmem>>, vector<1x8xf32>
    %18 = vector.broadcast %17 : vector<1x8xf32> to vector<8x8xf32>
    %19 = arith.addf %16, %18 : vector<8x8xf32>
    %c0_17 = arith.constant 0 : index
    %c0_18 = arith.constant 0 : index
    %20 = vector.load %arg8[%c0_17, %c0_18] : memref<8x8xf32, #tpu.memory_space<vmem>>, vector<8x8xf32>
    tpu.vector_store %arg8[%c0_17, %c0_18], %19 {strides = array<i32>} : memref<8x8xf32, #tpu.memory_space<vmem>>, vector<8x8xf32>,
    return
  }
  func.func @transform_0(%arg0: i32) -> (i32, i32) {
    %c0_i32 = arith.constant 0 : i32
    %c0_i32_0 = arith.constant 0 : i32
    return %arg0, %c0_i32 : i32, i32
  }
  func.func @transform_1(%arg0: i32) -> (i32, i32) {
    %c0_i32 = arith.constant 0 : i32
    %c0_i32_0 = arith.constant 0 : i32
    %c0_i32_1 = arith.constant 0 : i32
    return %c0_i32, %c0_i32_0 : i32, i32
  }
  func.func @transform_2(%arg0: i32) -> (i32, i32) {
    %c0_i32 = arith.constant 0 : i32
    %c0_i32_0 = arith.constant 0 : i32
    %c0_i32_1 = arith.constant 0 : i32
    return %c0_i32, %c0_i32_0 : i32, i32
  }
  func.func @transform_3(%arg0: i32) -> (i32, i32) {
    %c0_i32 = arith.constant 0 : i32
    %c0_i32_0 = arith.constant 0 : i32
    %c0_i32_1 = arith.constant 0 : i32
    return %c0_i32, %c0_i32_0 : i32, i32
  }
  func.func @transform_4(%arg0: i32) -> (i32, i32) {
    %c0_i32 = arith.constant 0 : i32
    %c0_i32_0 = arith.constant 0 : i32
    %c0_i32_1 = arith.constant 0 : i32
    return %c0_i32, %c0_i32_0 : i32, i32
  }
  func.func @transform_5(%arg0: i32) -> (i32, i32) {
    %c0_i32 = arith.constant 0 : i32
    %c0_i32_0 = arith.constant 0 : i32
    %c0_i32_1 = arith.constant 0 : i32
    return %c0_i32, %c0_i32_0 : i32, i32
  }
  func.func @transform_6(%arg0: i32) -> (i32, i32) {
    %c0_i32 = arith.constant 0 : i32
    %c0_i32_0 = arith.constant 0 : i32
    %c0_i32_1 = arith.constant 0 : i32
    return %c0_i32, %c0_i32_0 : i32, i32
  }
  func.func @transform_7(%arg0: i32) -> (i32, i32) {
    %c0_i32 = arith.constant 0 : i32
    %c0_i32_0 = arith.constant 0 : i32
    return %arg0, %c0_i32 : i32, i32
  }
}

</mosaic_0001>

<bundles_post_ra>
// kernel: poker_net_forward.1
= control target key start
LH: loop header
LB: loop body
LE: loop exit
PB: predicated region body
PF: predicated region fallthrough
CT: control target
= control target key end

     0   :  { %vm32_vm0 = vcmask 64512   ;;  %vm110_vm1 = vcmask 523264   ;;  %s276_s1 = inlined_call_operand.vmem [shape: f32[8,128], index: 1, kind: input, shape index: {}]   ;;  %s277_s0 = inlined_call_operand.vmem [shape: f32[8,8], index: 0, kind: input, shape index: {}]   ;;  %s278_s3 = inlined_call_operand.vmem [shape: f32[128,64], index: 3, kind: input, shape index: {}]   ;;  %s279_s2 = inlined_call_operand.vmem [shape: f32[1,128], index: 2, kind: input, shape index: {}]   ;;  %s280_s4 = inlined_call_operand.vmem [shape: f32[1,64], index: 4, kind: input, shape index: {}]   ;;  %s281_s5 = inlined_call_operand.vmem [shape: f32[64,8], index: 5, kind: input, shape index: {}]   ;;  %s282_s6 = inlined_call_operand.vmem [shape: f32[1,8], index: 6, kind: input, shape index: {}]   ;;  %s283_s7 = inlined_call_operand.vmem [shape: f32[8,8], index: 7, kind: output, shape index: {}]  }
   0x1   :  { %v27_v0 = vld [vmem:[%s276_s1] sm:$0xff]  ;;  %v72_v2 = vld [vmem:[%s278_s3 + $0x78] sm:$0xff]  ;;  %v71_v3 = vld [vmem:[%s278_s3 + $0x70] sm:$0xff] }
   0x2   :  { %v26_v1 = vld [vmem:[%s277_s0] sm:$0xff]  ;;  %51 = vmatpush.msra.mxu0 %v27_v0  ;;  %77 = vmatpush.msra.mxu1 %v72_v2  ;;  %v70_v4 = vld [vmem:[%s278_s3 + $0x68] sm:$0xff]  ;;  %v68_v6 = vld [vmem:[%s278_s3 + $0x58] sm:$0xff] }
   0x3   :  { %139 = vmatmul.msk.f32.vlgmr.msra.gmra.mxu0 %vm32_vm0, %v26_v1  ;;  %v69_v5 = vld [vmem:[%s278_s3 + $0x60] sm:$0xff]  ;;  %v67_v7 = vld [vmem:[%s278_s3 + $0x50] sm:$0xff]  ;;  %v66_v8 = vld [vmem:[%s278_s3 + $0x48] sm:$0xff] }
   0x4   :  { %78 = vmatpush.msra.mxu1 %v71_v3  ;;  %v65_v9 = vld [vmem:[%s278_s3 + $0x40] sm:$0xff]  ;;  %v64_v10 = vld [vmem:[%s278_s3 + $0x38] sm:$0xff]  ;;  %v63_v11 = vld [vmem:[%s278_s3 + $0x30] sm:$0xff] }
   0x5   :  { %v62_v12 = vld [vmem:[%s278_s3 + $0x28] sm:$0xff]  ;;  %v61_v13 = vld [vmem:[%s278_s3 + $0x20] sm:$0xff]  ;;  %v60_v14 = vld [vmem:[%s278_s3 + $0x18] sm:$0xff] }
   0x6   :  { %79 = vmatpush.msra.mxu1 %v70_v4  ;;  %v59_v15 = vld [vmem:[%s278_s3 + $0x10] sm:$0xff]  ;;  %v58_v16 = vld [vmem:[%s278_s3 + $0x8] sm:$0xff]  ;;  %v57_v17 = vld [vmem:[%s278_s3] sm:$0xff] }
   0x7   :  { %v105_v18 = vld [vmem:[%s281_s5 + $0x38] sm:$0xff]  ;;  %v104_v19 = vld [vmem:[%s281_s5 + $0x30] sm:$0xff]  ;;  %v103_v20 = vld [vmem:[%s281_s5 + $0x28] sm:$0xff] }
   0x8   :  { %80 = vmatpush.msra.mxu1 %v69_v5  ;;  %122 = vmatpush.msra.mxu2 %v105_v18  ;;  %v102_v21 = vld [vmem:[%s281_s5 + $0x20] sm:$0xff]  ;;  %v101_v22 = vld [vmem:[%s281_s5 + $0x18] sm:$0xff]  ;;  %v100_v27 = vld [vmem:[%s281_s5 + $0x10] sm:$0xff] }
   0x9   :  { %v141_v23 = vld [vmem:[%s279_s2] ss:$0 sm:$0xff]  ;;  %v99_v28 = vld [vmem:[%s281_s5 + $0x8] sm:$0xff] }
   0xa   :  { %81 = vmatpush.msra.mxu1 %v68_v6  ;;  %123 = vmatpush.msra.mxu2 %v104_v19  ;;  %v98_v29 = vld [vmem:[%s281_s5] sm:$0xff] }
   0xb   :  { %v142_v30 = vld [vmem:[%s280_s4] ss:$0 sm:$0xff] }
   0xc   :  { %82 = vmatpush.msra.mxu1 %v67_v7  ;;  %124 = vmatpush.msra.mxu2 %v103_v20  ;;  %v143_v34 = vld [vmem:[%s282_s6] ss:$0 sm:$0xff] }
   0xe   :  { %83 = vmatpush.msra.mxu1 %v66_v8  ;;  %125 = vmatpush.msra.mxu2 %v102_v21 }
  0x10   :  { %84 = vmatpush.msra.mxu1 %v65_v9  ;;  %126 = vmatpush.msra.mxu2 %v101_v22 }
  0x12   :  { %85 = vmatpush.msra.mxu1 %v64_v10  ;;  %127 = vmatpush.msra.mxu2 %v100_v27 }
  0x14   :  { %86 = vmatpush.msra.mxu1 %v63_v11  ;;  %128 = vmatpush.msra.mxu2 %v99_v28 }
  0x16   :  { %87 = vmatpush.msra.mxu1 %v62_v12  ;;  %129 = vmatpush.msra.mxu2 %v98_v29 }
  0x18   :  { %88 = vmatpush.msra.mxu1 %v61_v13 }
  0x1a   :  { %89 = vmatpush.msra.mxu1 %v60_v14 }
  0x1c   :  { %90 = vmatpush.msra.mxu1 %v59_v15 }
  0x1e   :  { %91 = vmatpush.msra.mxu1 %v58_v16 }
  0x20   :  { %92 = vmatpush.msra.mxu1 %v57_v17 }
  0x80   :  { %v53_v24 = vpop.f32.mrf.mxu0 }
  0x81   :  { %v54_v25 = vadd.f32 %v141_v23, %v53_v24 }
  0x83   :  { %v56_v26 = vmax.f32 %v54_v25, 0.0 }
  0x85   :  { %93 = vmatmul.f32.vlgmr.msra.gmra.mxu1 %v56_v26 }
 0x102   :  { %v94_v31 = vpop.f32.mrf.mxu1 }
 0x103   :  { %v95_v32 = vadd.f32 %v142_v30, %v94_v31 }
 0x105   :  { %v97_v33 = vmax.f32 %v95_v32, 0.0 }
 0x107   :  { %140 = vmatmul.msk.f32.vlgmr.msra.gmra.mxu2 %vm110_vm1, %v97_v33 }
 0x18a   :  { %v131_v35 = vpop.f32.mrf.mxu2 }
 0x18b   :  { %v132_v36 = vadd.f32 %v143_v34, %v131_v35 }
 0x18d   :  { %134 = vst.msk [vmem:[%s283_s7] sm:$0xff] %vm32_vm0, %v132_v36 }

</bundles_post_ra>
